<compile_context>
chip_gen: v7x
topology: tpu7x:2x2x1
jax: 0.10.0
libtpu: 0.0.40
codegen_flags: <defaults>
</compile_context>

<pallas_src>
import functools

import jax
import jax.numpy as jnp
from jax import lax
from jax.experimental import pallas as pl
from jax.experimental.pallas import tpu as pltpu

ALPHA = 0.1
BETA = 1.0
NUM_CLASSES = 6
EPS = 1e-6

_LANE = 128
# Cap so 2 buffers * (6 logit rows + 1 target row) * 4 B * tn stays ~<= 7 MiB,
# comfortably inside v5e's ~16 MiB scoped-VMEM default (v6e/v7x: 32 MiB).
_MAX_TILE_N = 131072


def _round_up(x, m):
    return (x + m - 1) // m * m


def _sce_kernel(logits_ref, targets_ref, out_ref, *, alpha, beta, ragged_rem):
    # logits_ref:  (C, TN)  classes on sublanes, samples on lanes
    # targets_ref: (1, TN)  int32
    # out_ref:     (1, 128) per-tile partial loss sum in lane 0, zeros elsewhere
    logits = logits_ref[...].astype(jnp.float32)            # (C, TN)
    tgt = targets_ref[...]                                   # (1, TN)
    c, tn = logits.shape

    classes = lax.broadcasted_iota(jnp.int32, (c, tn), 0)
    is_target = classes == tgt                               # bool, no f32 one_hot

    # numerically-stable log-softmax pieces (reductions over the tiny class axis)
    m = jnp.max(logits, axis=0, keepdims=True)               # (1, TN)
    e = jnp.exp(logits - m)                                  # (C, TN)
    s = jnp.sum(e, axis=0, keepdims=True)                    # (1, TN)
    lse = jnp.log(s) + m                                     # (1, TN)

    # cross-entropy per sample: lse - logits[target]
    logit_t = jnp.sum(jnp.where(is_target, logits, 0.0), axis=0, keepdims=True)
    ce = lse - logit_t                                       # (1, TN)

    # reverse cross-entropy: one exact reciprocal per sample, multiplies elsewhere.
    inv_s = pl.reciprocal(s, approx=False)                   # exact: keeps 1e-5 tol
    pred = jnp.minimum(e * inv_s, 1.0 - EPS)                 # upper clamp only (see header)
    # neg_rce = sum_{c != target} log(1 - pred_c)  (negation folded into combine)
    log1m = jnp.where(is_target, 0.0, jnp.log(1.0 - pred))   # finite: pred <= 1-1e-6
    neg_rce = jnp.sum(log1m, axis=0, keepdims=True)          # (1, TN)

    if beta == 1.0:                                          # static: skip the multiply
        loss_vec = alpha * ce - neg_rce
    else:
        loss_vec = alpha * ce - beta * neg_rce               # (1, TN)

    out_lane = lax.broadcasted_iota(jnp.int32, out_ref.shape, 1)

    def _store(vec):
        tile_sum = jnp.sum(vec, keepdims=True)               # (1, 1)
        out_ref[...] = jnp.where(out_lane == 0, tile_sum, 0.0)

    if ragged_rem:                                           # static: only if tn !| N
        is_last = pl.program_id(0) == pl.num_programs(0) - 1

        @pl.when(is_last)
        def _():
            lane = lax.broadcasted_iota(jnp.int32, (1, tn), 1)
            _store(jnp.where(lane < ragged_rem, loss_vec, 0.0))

        @pl.when(jnp.logical_not(is_last))
        def _():
            _store(loss_vec)
    else:
        _store(loss_vec)


def symmetric_cross_entropy_loss(logits, targets, *, alpha=ALPHA, beta=BETA,
                                 tile_n=65536):
    """logits: (N, C) float; targets: (N,) int class indices. Returns f32 scalar."""
    n, c = logits.shape

    # Relayout: classes on sublanes, batch (lane-dense) on lanes.  One XLA copy;
    # no jnp.pad (ragged last tile handled in-kernel).  If bf16 is acceptable,
    # cast before the transpose to halve the relayout bytes.
    logits_cn = jnp.transpose(logits, (1, 0))                # (C, N)
    targets_row = targets.astype(jnp.int32).reshape(1, n)    # (1, N)

    # Tile width: large (step overhead <5%), multiple of 128, capped for VMEM
    # (v5e scoped default) and so that num_tiles >= 2 whenever N allows it
    # (both v7x TensorCores engage via the "parallel" grid axis).
    tn = _round_up(min(int(tile_n), _MAX_TILE_N), _LANE)
    tn = min(tn, _round_up(pl.cdiv(n, 2), _LANE))
    tn = max(tn, _LANE)
    num_tiles = pl.cdiv(n, tn)
    rem = n % tn                                             # 0 => last tile full

    kernel = functools.partial(_sce_kernel, alpha=float(alpha), beta=float(beta),
                               ragged_rem=int(rem))

    partials = pl.pallas_call(
        kernel,
        out_shape=jax.ShapeDtypeStruct((1, num_tiles * _LANE), jnp.float32),
        grid=(num_tiles,),
        in_specs=[
            pl.BlockSpec((c, tn), lambda i: (0, i)),         # logits tile
            pl.BlockSpec((1, tn), lambda i: (0, i)),         # targets tile
        ],
        out_specs=pl.BlockSpec((1, _LANE), lambda i: (0, i)),  # per-tile partial sum
        compiler_params=pltpu.CompilerParams(
            dimension_semantics=("parallel",)),
    )(logits_cn, targets_row)

    # Tiny final reduction (num_tiles * 128 floats) + true-N mean.
    return jnp.sum(partials) / jnp.float32(n)


def _reference_loss(logits, targets, alpha=ALPHA, beta=BETA, num_classes=NUM_CLASSES):
    logits = logits.astype(jnp.float32)
    log_probs = jax.nn.log_softmax(logits, axis=1)
    ce = -jnp.take_along_axis(log_probs, targets[:, None], axis=1)[:, 0]
    pred = jnp.clip(jax.nn.softmax(logits, axis=1), EPS, 1.0 - EPS)
    one_hot = jax.nn.one_hot(targets, num_classes, dtype=jnp.float32)
    rce = jnp.sum(-(1.0 - one_hot) * jnp.log(1.0 - pred), axis=1)
    return jnp.mean(alpha * ce + beta * rce)


if __name__ == "__main__":
    key = jax.random.PRNGKey(0)
    k1, k2, k3, k4 = jax.random.split(key, 4)

    # Small smoke test (module default num_classes=6).
    N, C = 8, NUM_CLASSES
    logits = jax.random.normal(k1, (N, C), dtype=jnp.float32)
    targets = jax.random.randint(k2, (N,), 0, C, dtype=jnp.int32)
    loss = jax.block_until_ready(symmetric_cross_entropy_loss(logits, targets))
    ref = _reference_loss(logits, targets)
    assert jnp.allclose(loss, ref, rtol=1e-5, atol=1e-5), (loss, ref)

    # Multi-tile + ragged-last-tile check (exercises grid, last-tile masking,
    # and the per-tile partial-sum output).
    N2 = 300
    logits2 = jax.random.normal(k3, (N2, C), dtype=jnp.float32)
    targets2 = jax.random.randint(k4, (N2,), 0, C, dtype=jnp.int32)
    loss2 = jax.block_until_ready(
        symmetric_cross_entropy_loss(logits2, targets2, tile_n=128))
    ref2 = _reference_loss(logits2, targets2)
    assert jnp.allclose(loss2, ref2, rtol=1e-5, atol=1e-5), (loss2, ref2)

    print("KERNEL_OK")
</pallas_src>

<mosaic_0001>
module attributes {stable_mosaic.version = 11 : i64} {
  func.func @_sce_kernel(%arg0: i32, %arg1: memref<6x128xf32, #tpu.memory_space<vmem>>, %arg2: memref<1x128xi32, #tpu.memory_space<vmem>>, %arg3: memref<1x128xf32, #tpu.memory_space<vmem>>) attributes {dimension_semantics = [#tpu.dimension_semantics<parallel>], iteration_bounds = array<i64: 1>, scalar_prefetch = 0 : i64, scratch_operands = 0 : i64, tpu.core_type = #tpu.core_type<tc>, window_params = [{transform_indices = @transform_0, window_bounds = array<i64: 6, 128>}, {transform_indices = @transform_1, window_bounds = array<i64: 1, 128>}, {transform_indices = @transform_2, window_bounds = array<i64: 1, 128>}]} {
    %c0 = arith.constant 0 : index
    %c0_0 = arith.constant 0 : index
    %0 = vector.load %arg1[%c0, %c0_0] : memref<6x128xf32, #tpu.memory_space<vmem>>, vector<6x128xf32>
    %c0_1 = arith.constant 0 : index
    %c0_2 = arith.constant 0 : index
    %1 = vector.load %arg2[%c0_1, %c0_2] : memref<1x128xi32, #tpu.memory_space<vmem>>, vector<1x128xi32>
    %2 = tpu.iota {dimensions = array<i32: 0>} : vector<6x128xi32>
    %3 = vector.broadcast %1 : vector<1x128xi32> to vector<6x128xi32>
    %4 = arith.cmpi eq, %2, %3 : vector<6x128xi32>
    %cst = arith.constant dense<0xFF800000> : vector<128xf32>
    %5 = vector.multi_reduction <maximumf>, %0, %cst [0] : vector<6x128xf32> to vector<128xf32>
    %6 = vector.shape_cast %5 : vector<128xf32> to vector<1x128xf32>
    %7 = vector.broadcast %6 : vector<1x128xf32> to vector<6x128xf32>
    %8 = arith.subf %0, %7 : vector<6x128xf32>
    %9 = math.exp %8 : vector<6x128xf32>
    %cst_3 = arith.constant dense<0.000000e+00> : vector<128xf32>
    %10 = vector.multi_reduction <add>, %9, %cst_3 [0] : vector<6x128xf32> to vector<128xf32>
    %11 = vector.shape_cast %10 : vector<128xf32> to vector<1x128xf32>
    %12 = math.log %11 : vector<1x128xf32>
    %13 = arith.addf %12, %6 : vector<1x128xf32>
    %cst_4 = arith.constant 0.000000e+00 : f32
    %14 = vector.broadcast %cst_4 : f32 to vector<6x128xf32>
    %15 = arith.select %4, %0, %14 : vector<6x128xi1>, vector<6x128xf32>
    %cst_5 = arith.constant dense<0.000000e+00> : vector<128xf32>
    %16 = vector.multi_reduction <add>, %15, %cst_5 [0] : vector<6x128xf32> to vector<128xf32>
    %17 = vector.shape_cast %16 : vector<128xf32> to vector<1x128xf32>
    %18 = arith.subf %13, %17 : vector<1x128xf32>
    %19 = tpu.reciprocal %11 : vector<1x128xf32> -> vector<1x128xf32>
    %20 = vector.broadcast %19 : vector<1x128xf32> to vector<6x128xf32>
    %21 = arith.mulf %9, %20 : vector<6x128xf32>
    %cst_6 = arith.constant 0.999998986 : f32
    %22 = vector.broadcast %cst_6 : f32 to vector<6x128xf32>
    %23 = arith.minimumf %21, %22 : vector<6x128xf32>
    %cst_7 = arith.constant 1.000000e+00 : f32
    %24 = vector.broadcast %cst_7 : f32 to vector<6x128xf32>
    %25 = arith.subf %24, %23 : vector<6x128xf32>
    %26 = math.log %25 : vector<6x128xf32>
    %cst_8 = arith.constant 0.000000e+00 : f32
    %27 = vector.broadcast %cst_8 : f32 to vector<6x128xf32>
    %28 = arith.select %4, %27, %26 : vector<6x128xi1>, vector<6x128xf32>
    %cst_9 = arith.constant dense<0.000000e+00> : vector<128xf32>
    %29 = vector.multi_reduction <add>, %28, %cst_9 [0] : vector<6x128xf32> to vector<128xf32>
    %30 = vector.shape_cast %29 : vector<128xf32> to vector<1x128xf32>
    %cst_10 = arith.constant 1.000000e-01 : f32
    %31 = vector.broadcast %cst_10 : f32 to vector<1x128xf32>
    %32 = arith.mulf %31, %18 : vector<1x128xf32>
    %33 = arith.subf %32, %30 : vector<1x128xf32>
    %34 = tpu.iota {dimensions = array<i32: 1>} : vector<1x128xi32>
    %c0_i32 = arith.constant 0 : i32
    %35 = arith.cmpi eq, %arg0, %c0_i32 : i32
    %36 = arith.extui %35 : i1 to i32
    %c0_i32_11 = arith.constant 0 : i32
    %37 = arith.cmpi ne, %36, %c0_i32_11 : i32
    scf.if %37 {
      %41 = tpu.iota {dimensions = array<i32: 1>} : vector<1x128xi32>
      %c8_i32 = arith.constant 8 : i32
      %42 = vector.broadcast %c8_i32 : i32 to vector<1x128xi32>
      %43 = arith.cmpi slt, %41, %42 : vector<1x128xi32>
      %cst_13 = arith.constant 0.000000e+00 : f32
      %44 = vector.broadcast %cst_13 : f32 to vector<1x128xf32>
      %45 = arith.select %43, %33, %44 : vector<1x128xi1>, vector<1x128xf32>
      %46 = vector.shape_cast %45 : vector<1x128xf32> to vector<1x1x128xf32>
      %cst_14 = arith.constant dense<0.000000e+00> : vector<1xf32>
      %47 = vector.multi_reduction <add>, %46, %cst_14 [1, 2] : vector<1x1x128xf32> to vector<1xf32>
      %48 = vector.shape_cast %47 : vector<1xf32> to vector<1x1x1xf32>
      %49 = vector.extract %48[0, 0, 0] : f32 from vector<1x1x1xf32>
      %50 = vector.broadcast %49 : f32 to vector<1x1xf32>
      %c0_i32_15 = arith.constant 0 : i32
      %51 = vector.broadcast %c0_i32_15 : i32 to vector<1x128xi32>
      %52 = arith.cmpi eq, %34, %51 : vector<1x128xi32>
      %cst_16 = arith.constant 0.000000e+00 : f32
      %53 = vector.shape_cast %50 : vector<1x1xf32> to vector<1x1xf32>
      %54 = vector.broadcast %53 : vector<1x1xf32> to vector<1x128xf32>
      %55 = vector.broadcast %cst_16 : f32 to vector<1x128xf32>
      %56 = arith.select %52, %54, %55 : vector<1x128xi1>, vector<1x128xf32>
      %c0_17 = arith.constant 0 : index
      %c0_18 = arith.constant 0 : index
      %57 = vector.load %arg3[%c0_17, %c0_18] : memref<1x128xf32, #tpu.memory_space<vmem>>, vector<1x128xf32>
      tpu.vector_store %arg3[%c0_17, %c0_18], %56 {strides = array<i32>} : memref<1x128xf32, #tpu.memory_space<vmem>>, vector<1x128xf32>,
    } else {
    }
    %true = arith.constant true
    %38 = arith.xori %35, %true : i1
    %39 = arith.extui %38 : i1 to i32
    %c0_i32_12 = arith.constant 0 : i32
    %40 = arith.cmpi ne, %39, %c0_i32_12 : i32
    scf.if %40 {
      %41 = vector.shape_cast %33 : vector<1x128xf32> to vector<1x1x128xf32>
      %cst_13 = arith.constant dense<0.000000e+00> : vector<1xf32>
      %42 = vector.multi_reduction <add>, %41, %cst_13 [1, 2] : vector<1x1x128xf32> to vector<1xf32>
      %43 = vector.shape_cast %42 : vector<1xf32> to vector<1x1x1xf32>
      %44 = vector.extract %43[0, 0, 0] : f32 from vector<1x1x1xf32>
      %45 = vector.broadcast %44 : f32 to vector<1x1xf32>
      %c0_i32_14 = arith.constant 0 : i32
      %46 = vector.broadcast %c0_i32_14 : i32 to vector<1x128xi32>
      %47 = arith.cmpi eq, %34, %46 : vector<1x128xi32>
      %cst_15 = arith.constant 0.000000e+00 : f32
      %48 = vector.shape_cast %45 : vector<1x1xf32> to vector<1x1xf32>
      %49 = vector.broadcast %48 : vector<1x1xf32> to vector<1x128xf32>
      %50 = vector.broadcast %cst_15 : f32 to vector<1x128xf32>
      %51 = arith.select %47, %49, %50 : vector<1x128xi1>, vector<1x128xf32>
      %c0_16 = arith.constant 0 : index
      %c0_17 = arith.constant 0 : index
      %52 = vector.load %arg3[%c0_16, %c0_17] : memref<1x128xf32, #tpu.memory_space<vmem>>, vector<1x128xf32>
      tpu.vector_store %arg3[%c0_16, %c0_17], %51 {strides = array<i32>} : memref<1x128xf32, #tpu.memory_space<vmem>>, vector<1x128xf32>,
    } else {
    }
    return
  }
  func.func @transform_0(%arg0: i32) -> (i32, i32) {
    %c0_i32 = arith.constant 0 : i32
    %c0_i32_0 = arith.constant 0 : i32
    return %c0_i32, %arg0 : i32, i32
  }
  func.func @transform_1(%arg0: i32) -> (i32, i32) {
    %c0_i32 = arith.constant 0 : i32
    %c0_i32_0 = arith.constant 0 : i32
    return %c0_i32, %arg0 : i32, i32
  }
  func.func @transform_2(%arg0: i32) -> (i32, i32) {
    %c0_i32 = arith.constant 0 : i32
    %c0_i32_0 = arith.constant 0 : i32
    return %c0_i32, %arg0 : i32, i32
  }
}

</mosaic_0001>

<bundles_post_ra>
// kernel: tpu_custom_call.1
= control target key start
LH: loop header
LB: loop body
LE: loop exit
PB: predicated region body
PF: predicated region fallthrough
CT: control target
= control target key end

     0   :  { %7 = vsyncpa [#allocation3], 0  ;;  %s247_s0 = inlined_call_operand.hbm [shape: f32[6,8], index: 0, kind: input, shape index: {}]   ;;  %s248_s1 = inlined_call_operand.vmem [shape: s32[1,8], index: 1, kind: input, shape index: {}]   ;;  %s249_s2 = inlined_call_operand.hbm [shape: f32[1,128], index: 2, kind: output, shape index: {}]  }
   0x1   :  { %8 = vsyncpa [#allocation4], 0  ;;  %s197_s9 = smov [#allocation2]   ;;  %s149_s13 = scalar_lea.hbm %s247_s0, 128 }
   0x2   :  { %s15_s10 = sshll.u32 %s197_s9, 4  ;;  %p150_p0 = scmp.ne.s32.totalorder %s247_s0, %s149_s13  ;;  %s16_s10 = int_to_ptr.vmem [resolvable:$true] %s15_s10 }
   0x3   :  { %p153_p1 = scmp.lt.u32.totalorder %s149_s13, %s247_s0 }
   0x5   :  { %p155_p2 = pnand %p153_p1, %p150_p0 }
   0x7   :  { %158 = shalt.err (!%p155_p2)
}
   0x8   :  { %s159_s18 = scalar_lea.vmem %s16_s10, 128  ;;  %p164_p4 = scmp.lt.s32.totalorder %s16_s10, %s16_s10 }
   0x9   :  { %p160_p3 = scmp.ne.s32.totalorder %s16_s10, %s159_s18  ;;  %p165_p5 = scmp.lt.s32.totalorder %s159_s18, %s159_s18 }
   0xb   :  { %p166_p6 = por %p165_p5, %p164_p4 }
   0xd   :  { %p167_p7 = pnand %p166_p6, %p160_p3 }
   0xf   :  { %170 = shalt.err (!%p167_p7)
}
  0x10   :  { %18 = dma.hbm_to_vmem [thread:$0]  %s247_s0, 128, %s16_s10, [#allocation3]  }
  0x11   :  { %193 = dma.done.wait [#allocation3], 128  }
  0x12   :  { %194 = vsyncadd [#allocation3], 4294967168  ;;  %vm33_vm0 = vcmask 1045504   ;;  %v24_v0 = vld [vmem:[#allocation2] sm:$0x3f]  ;;  %v26_v9 = vlaneseq  ;;  %vm87_vm3 = vcmask 1040384  }
  0x13   :  { %v34_v1 = vsel %vm33_vm0, %v24_v0, -inf  ;;  %v136_v12 = vld [vmem:[%s248_s1] ss:$0 sm:$0xff]  ;;  %s198_s0 = smov [#allocation5]  }
  0x14   :  { %v35_v2 = vrot.slane %v34_v1, 4  ;;  %v27_v11 = vshrl.u32 %v26_v9, 7  ;;  %v80_v45 = vand.u32 127, %v26_v9  ;;  %s127_s1 = sshll.u32 %s198_s0, 4  ;;  %s128_s1 = int_to_ptr.vmem [resolvable:$true] %s127_s1 }
  0x15   :  { %s171_s24 = scalar_lea.vmem %s128_s1, 16  ;;  %s175_s25 = scalar_lea.vmem %s128_s1, 32 }
  0x16   :  { %v36_v3 = vmax.f32 %v34_v1, %v35_v2  ;;  %vm32_vm1 = vcmp.eq.s32.totalorder %v27_v11, %v136_v12  ;;  %vm85_vm2 = vcmp.lt.s32.totalorder %v80_v45, 8  ;;  %vm98_vm4 = vcmp.eq.s32.totalorder %v80_v45, 0  ;;  %p172_p8 = scmp.ne.s32.totalorder %s128_s1, %s171_s24  ;;  %p176_p9 = scmp.lt.s32.totalorder %s128_s1, %s128_s1 }
  0x17   :  { %v54_v13 = vsel %vm32_vm1, %v24_v0, 0.0  ;;  %p177_p10 = scmp.lt.s32.totalorder %s175_s25, %s171_s24 }
  0x18   :  { %v37_v4 = vrot.slane %v36_v3, 2  ;;  %v55_v17 = vsel %vm33_vm0, %v54_v13, 0.0 }
  0x19   :  { %v56_v19 = vrot.slane %v55_v17, 4  ;;  %p178_p11 = por %p177_p10, %p176_p9 }
  0x1a   :  { %v38_v5 = vmax.f32 %v36_v3, %v37_v4 }
  0x1b   :  { %v57_v22 = vadd.f32 %v56_v19, %v55_v17  ;;  %p179_p12 = pnand %p178_p11, %p172_p8 }
  0x1c   :  { %v39_v6 = vrot.slane %v38_v5, 1 }
  0x1d   :  { %v58_v25 = vrot.slane %v57_v22, 2 }
  0x1e   :  { %v40_v7 = vmax.f32 %v38_v5, %v39_v6 }
  0x1f   :  { %v59_v26 = vadd.f32 %v58_v25, %v57_v22 }
  0x20   :  { %v41_v8 = vsub.f32 %v24_v0, %v40_v7 }
  0x21   :  { %v60_v27 = vrot.slane %v59_v26, 1 }
  0x22   :  { %v42_v10 = vmul.f32 1.442695, %v41_v8 }
  0x23   :  { %v61_v31 = vadd.f32 %v60_v27, %v59_v26 }
  0x24   :  { %141 = vpow2.f32 %v42_v10 }
  0x2e   :  { %v142_v14 = vpop.eup %141 }
  0x2f   :  { %v44_v15 = vsel %vm33_vm0, %v142_v14, 0.0 }
  0x30   :  { %v45_v16 = vrot.slane %v44_v15, 4 }
  0x32   :  { %v46_v18 = vadd.f32 %v45_v16, %v44_v15 }
  0x34   :  { %v47_v20 = vrot.slane %v46_v18, 2 }
  0x36   :  { %v48_v21 = vadd.f32 %v47_v20, %v46_v18 }
  0x38   :  { %v49_v23 = vrot.slane %v48_v21, 1 }
  0x3a   :  { %v50_v24 = vadd.f32 %v49_v23, %v48_v21 }
  0x3c   :  { %143 = vlog2.f32 %v50_v24 }
  0x3d   :  { %145 = vrcp.f32 %v50_v24 }
  0x46   :  { %v144_v28 = vpop.eup %143 }
  0x47   :  { %v146_v29 = vpop.eup %145  ;;  %v52_v30 = vmul.f32 0.6931472, %v144_v28 }
  0x48   :  { %v64_v32 = vmul.f32 %v146_v29, %v142_v14 }
  0x49   :  { %v53_v33 = vadd.f32 %v52_v30, %v40_v7 }
  0x4a   :  { %v65_v34 = vmin.f32 %v64_v32, 0.999999 }
  0x4b   :  { %v62_v35 = vsub.f32 %v53_v33, %v61_v31 }
  0x4c   :  { %v66_v36 = vsub.f32 1.0, %v65_v34 }
  0x4d   :  { %v77_v47 = vmul.f32 0.1, %v62_v35 }
  0x4e   :  { %147 = vlog2.f32 %v66_v36 }
  0x58   :  { %v148_v37 = vpop.eup %147 }
  0x59   :  { %v68_v38 = vmul.f32 0.6931472, %v148_v37 }
  0x5b   :  { %v69_v39 = vsel %vm32_vm1, 0.0, %v68_v38 }
  0x5c   :  { %v70_v40 = vsel %vm33_vm0, %v69_v39, 0.0 }
  0x5d   :  { %v71_v41 = vrot.slane %v70_v40, 4 }
  0x5f   :  { %v72_v42 = vadd.f32 %v71_v41, %v70_v40 }
  0x61   :  { %v73_v43 = vrot.slane %v72_v42, 2 }
  0x63   :  { %v74_v44 = vadd.f32 %v73_v43, %v72_v42 }
  0x65   :  { %v75_v46 = vrot.slane %v74_v44, 1 }
  0x67   :  { %v76_v48 = vadd.f32 %v75_v46, %v74_v44 }
  0x69   :  { %v78_v49 = vsub.f32 %v77_v47, %v76_v48 }
  0x6b   :  { %v86_v50 = vsel %vm85_vm2, %v78_v49, 0.0 }
  0x6c   :  { %v88_v51 = vsel %vm87_vm3, %v86_v50, 0.0 }
  0x6d   :  { %89 = vadd.xlane.f32.xlu0 %v88_v51 }
  0xfa   :  { %v90_v52 = vpop.xlane.xlu0 %89 }
  0xfb   :  { %v91_v53 = vrot.slane %v90_v52, 4 }
  0xfd   :  { %v92_v54 = vadd.f32 %v91_v53, %v90_v52 }
  0xff   :  { %v93_v55 = vrot.slane %v92_v54, 2 }
 0x101   :  { %v94_v56 = vadd.f32 %v93_v55, %v92_v54 }
 0x103   :  { %v95_v57 = vrot.slane %v94_v56, 1 }
 0x105   :  { %v96_v58 = vadd.f32 %v95_v57, %v94_v56 }
 0x107   :  { %137 = vpush %v96_v58 }
 0x138   :  { %s138_s23 = spop %137 }
 0x139   :  { %v99_v59 = vstv %s138_s23 }
 0x13a   :  { %v100_v60 = vsel %vm98_vm4, %v99_v59, 0.0 }
 0x13b   :  { %101 = vst [vmem:[#allocation5] sm:$0x1] %v100_v60 }
 0x13c   :  { %182 = shalt.err (!%p179_p12)
}
 0x13d   :  { %s183_s28 = scalar_lea.hbm %s249_s2, 16 }
 0x13e   :  { %p184_p13 = scmp.ne.s32.totalorder %s249_s2, %s183_s28  ;;  %p187_p0 = scmp.lt.u32.totalorder %s183_s28, %s249_s2 }
 0x140   :  { %p189_p1 = pnand %p187_p0, %p184_p13 }
 0x142   :  { %192 = shalt.err (!%p189_p1)
}
 0x143   :  { %130 = dma.vmem_to_hbm [thread:$0]  %s128_s1, 16, %s249_s2, [#allocation4]  }
 0x144   :  { %195 = dma.done.wait [#allocation4], 16  }
 0x145   :  { %196 = vsyncadd [#allocation4], 4294967280 }
 0x146   :  { %134 = vsyncpa [#allocation3], 1 }
 0x147   :  { %135 = vsyncpa [#allocation4], 1 }

</bundles_post_ra>
